<compile_context>
chip_gen: v7x
topology: tpu7x:2x2x1
jax: 0.10.0
libtpu: 0.0.40
codegen_flags: <defaults>
</compile_context>

<pallas_src>
import jax
import jax.numpy as jnp
from jax import lax
from jax.experimental import pallas as pl
from jax.experimental.pallas import tpu as pltpu


def _make_sr_kernel(H, W, S, use_im2col, mxu_dtype):
    HW = H * W

    def kernel(x_ref, w1_ref, b1_ref, w2_ref, b2_ref, out_ref, *scratch):
        # x_ref  : (1, S, HW)   stacked channels on sublanes, flattened spatial on lanes
        # w*_ref : (S, 9*S) when use_im2col else (9, S, S)  (block-diag across the stack)
        # b*_ref : (S, 1)
        # out_ref: (1, S, HW)
        im2col = scratch[0] if use_im2col else None
        x = x_ref[0].astype(jnp.float32)                       # (S, HW), lane-dense

        # SAME-padding boundary masks built once from a lane iota (no padded scratch).
        lane = lax.broadcasted_iota(jnp.int32, (1, HW), 1)
        col = (lane & (W - 1)) if (W & (W - 1)) == 0 else (lane % W)
        row_ok = {-1: lane >= W, 0: None, 1: lane < (H - 1) * W}
        col_ok = {-1: col >= 1, 0: None, 1: col < (W - 1)}

        def taps(v):
            """Yield the 9 zero-padded 3x3 taps of v one at a time
            (roll -> mask -> consume) so each (S, HW) temporary dies immediately."""
            t = 0
            for dy in (-1, 0, 1):
                for dx in (-1, 0, 1):
                    d = dy * W + dx                            # out[p] needs v[p + d]
                    tap = pltpu.roll(v, shift=(-d) % HW, axis=1) if d != 0 else v
                    m = None
                    for part in (row_ok[dy], col_ok[dx]):
                        if part is not None:
                            m = part if m is None else jnp.logical_and(m, part)
                    if m is not None:
                        tap = jnp.where(m, tap, 0.0)           # zero out-of-bounds sources
                    yield t, tap
                    t += 1

        def conv3x3(v, w_ref, acc0):
            if use_im2col:
                # Write each tap at its static, sublane-aligned row offset, then one
                # big matmul with contraction K = 9*S.
                for t, tap in taps(v):
                    im2col[t * S:(t + 1) * S, :] = tap.astype(mxu_dtype)
                return acc0 + jnp.dot(w_ref[...], im2col[...],
                                      preferred_element_type=jnp.float32)
            acc = acc0                                          # bias (and skip) pre-folded
            for t, tap in taps(v):
                acc = acc + jnp.dot(w_ref[t], tap.astype(mxu_dtype),
                                    preferred_element_type=jnp.float32)
            return acc

        b1 = jnp.broadcast_to(b1_ref[...], (S, HW))
        b2 = jnp.broadcast_to(b2_ref[...], (S, HW))

        mid = conv3x3(x, w1_ref, b1)                            # conv1 + bias
        out = conv3x3(mid, w2_ref, b2 + x)                      # conv2 + bias + skip
        out_ref[0] = out.astype(out_ref.dtype)                  # lane-dense unmasked store

    return kernel


def sr_convblock(x_nchw, w1, b1, w2, b2, *, use_bf16_mxu=False):
    """Pallas SR_convblock.forward.

    x_nchw: (N, C, H, W) f32; w1/w2: HWIO (3, 3, C, C); b1/b2: (C,).
    use_bf16_mxu: cast matmul operands to bf16 (f32 accumulation) — faster on v6e/v7x
    MXUs, numerics loosen slightly vs the f32 reference.
    """
    N, C, H, W = x_nchw.shape
    HW = H * W

    # Images stacked per grid step: fill the 8 f32 sublanes when C < 8.
    G = max(1, 8 // C) if C < 8 else 1
    G = min(G, max(N, 1))
    Np = ((N + G - 1) // G) * G
    if Np != N:  # pad batch with zero images, sliced off at the end
        x_nchw = jnp.concatenate(
            [x_nchw, jnp.zeros((Np - N, C, H, W), x_nchw.dtype)], axis=0)
    S = G * C
    n_steps = Np // G

    # Free (contiguous) reshape only -- no pad / transpose HBM round trips for x.
    x2d = x_nchw.reshape(n_steps, S, HW)

    mxu_dtype = jnp.bfloat16 if use_bf16_mxu else jnp.float32
    use_im2col = (S % 8 == 0)   # sublane-aligned scratch rows; real EDSR widths (C=64) hit this

    # HWIO (3,3,Cin,Cout) -> (9, Cout, Cin), tap-major; tap = (dy+1)*3 + (dx+1).
    def tap_major(w):
        return jnp.transpose(w, (0, 1, 3, 2)).reshape(9, C, C)

    def block_diag(w9):
        # (9, C, C) -> (9, S, S): kron(I_G, W_t) per tap, so the stacked images don't mix.
        eye = jnp.eye(G, dtype=w9.dtype)
        return jnp.einsum('gh,tab->tgahb', eye, w9).reshape(9, S, S)

    w1t, w2t = tap_major(w1), tap_major(w2)
    if G > 1:
        w1t, w2t = block_diag(w1t), block_diag(w2t)             # (9, S, S)

    if use_im2col:
        # (9, S, S) -> (S, 9S): w_pack[co, t*S + ci] = w9[t, co, ci]
        def pack(w9):
            return jnp.transpose(w9, (1, 0, 2)).reshape(S, 9 * S)
        w1k, w2k = pack(w1t), pack(w2t)
        w_block = (S, 9 * S)
        w_idx = lambda b: (0, 0)
        scratch_shapes = [pltpu.VMEM((9 * S, HW), mxu_dtype)]
    else:
        w1k, w2k = w1t, w2t
        w_block = (9, S, S)
        w_idx = lambda b: (0, 0, 0)
        scratch_shapes = []

    w1k = w1k.astype(mxu_dtype)
    w2k = w2k.astype(mxu_dtype)
    # Stacked bias: row g*C + c holds b[c].
    b1k = jnp.tile(b1, G).reshape(S, 1).astype(jnp.float32)
    b2k = jnp.tile(b2, G).reshape(S, 1).astype(jnp.float32)

    out = pl.pallas_call(
        _make_sr_kernel(H, W, S, use_im2col, mxu_dtype),
        out_shape=jax.ShapeDtypeStruct((n_steps, S, HW), x_nchw.dtype),
        grid_spec=pltpu.PrefetchScalarGridSpec(
            num_scalar_prefetch=0,
            grid=(n_steps,),
            in_specs=[
                pl.BlockSpec((1, S, HW), lambda b: (b, 0, 0)),
                pl.BlockSpec(w_block, w_idx),
                pl.BlockSpec((S, 1), lambda b: (0, 0)),
                pl.BlockSpec(w_block, w_idx),
                pl.BlockSpec((S, 1), lambda b: (0, 0)),
            ],
            out_specs=pl.BlockSpec((1, S, HW), lambda b: (b, 0, 0)),
            scratch_shapes=scratch_shapes,
        ),
        # No vmem_limit_bytes: 64 MiB would be the whole physical VMEM on a v7x core; the
        # default scoped limit is ample for these blocks (re-derive per generation when the
        # H-tiled variant lands).
        compiler_params=pltpu.CompilerParams(
            dimension_semantics=("parallel",)),
    )(x2d, w1k, b1k, w2k, b2k)

    out = out.reshape(Np, C, H, W)
    return out[:N] if Np != N else out


# ----------------------------- pure-JAX reference -----------------------------
def _conv2d_same(x_nhwc, w_hwio, b):
    y = lax.conv_general_dilated(
        x_nhwc, w_hwio, window_strides=(1, 1), padding='SAME',
        dimension_numbers=('NHWC', 'HWIO', 'NHWC'),
        precision=lax.Precision.HIGHEST)
    return y + b[None, None, None, :]


def sr_convblock_ref(x_nchw, w1, b1, w2, b2):
    x = jnp.transpose(x_nchw, (0, 2, 3, 1))
    y = _conv2d_same(_conv2d_same(x, w1, b1), w2, b2) + x
    return jnp.transpose(y, (0, 3, 1, 2))


if __name__ == "__main__":
    key = jax.random.PRNGKey(0)

    def make_params(k, C):
        k2, k3, k4, k5 = jax.random.split(k, 4)
        fan_in = C * 9
        bound = 1.0 / (fan_in ** 0.5)        # nn.Conv2d default init scale
        w1 = jax.random.uniform(k2, (3, 3, C, C), jnp.float32, -bound, bound)
        b1 = jax.random.uniform(k3, (C,), jnp.float32, -bound, bound)
        w2 = jax.random.uniform(k4, (3, 3, C, C), jnp.float32, -bound, bound)
        b2 = jax.random.uniform(k5, (C,), jnp.float32, -bound, bound)
        return w1, b1, w2, b2

    k_a, k_b, k_c = jax.random.split(key, 3)

    # Test 1: C=4 -> two images stacked per step (S=8 fills the f32 sublanes), im2col path.
    N, C, H, W = 2, 4, 16, 16
    x = jax.random.normal(k_a, (N, C, H, W), jnp.float32)
    params = make_params(k_b, C)
    out = jax.block_until_ready(sr_convblock(x, *params))
    ref = sr_convblock_ref(x, *params)
    assert out.shape == x.shape and out.dtype == x.dtype
    if not jnp.allclose(out, ref, rtol=1e-4, atol=1e-4):
        raise AssertionError("Pallas f32 im2col path mismatch vs lax.conv reference")

    # Test 1b: bf16 MXU-operand opt-in (f32 accumulation) -- looser tolerance.
    out_bf = jax.block_until_ready(sr_convblock(x, *params, use_bf16_mxu=True))
    if not jnp.allclose(out_bf, ref, rtol=5e-2, atol=5e-2):
        raise AssertionError("Pallas bf16-MXU opt-in mismatch vs lax.conv reference")

    # Test 2: C=3 (stacked S=6, not a multiple of 8) -> per-tap dot fallback; also
    # exercises batch padding (N=3 -> 4) and a 2-step parallel grid.
    N2, C2, H2, W2 = 3, 3, 8, 16
    x2 = jax.random.normal(k_c, (N2, C2, H2, W2), jnp.float32)
    params2 = make_params(jax.random.PRNGKey(1), C2)
    out2 = jax.block_until_ready(sr_convblock(x2, *params2))
    ref2 = sr_convblock_ref(x2, *params2)
    if not jnp.allclose(out2, ref2, rtol=1e-4, atol=1e-4):
        raise AssertionError("Pallas f32 per-tap path mismatch vs lax.conv reference")

    print("KERNEL_OK")
</pallas_src>

<mosaic_0001>
module attributes {stable_mosaic.version = 11 : i64} {
  func.func @kernel(%arg0: i32, %arg1: memref<1x8x256xf32, #tpu.memory_space<vmem>>, %arg2: memref<8x72xf32, #tpu.memory_space<vmem>>, %arg3: memref<8x1xf32, #tpu.memory_space<vmem>>, %arg4: memref<8x72xf32, #tpu.memory_space<vmem>>, %arg5: memref<8x1xf32, #tpu.memory_space<vmem>>, %arg6: memref<1x8x256xf32, #tpu.memory_space<vmem>>, %arg7: memref<72x256xf32, #tpu.memory_space<vmem>>) attributes {dimension_semantics = [#tpu.dimension_semantics<parallel>], iteration_bounds = array<i64: 1>, scalar_prefetch = 0 : i64, scratch_operands = 1 : i64, tpu.core_type = #tpu.core_type<tc>, window_params = [{transform_indices = @transform_0, window_bounds = array<i64: 1, 8, 256>}, {pipeline_mode = #tpu.pipeline_mode<synchronous>, transform_indices = @transform_1, window_bounds = array<i64: 8, 72>}, {pipeline_mode = #tpu.pipeline_mode<synchronous>, transform_indices = @transform_2, window_bounds = array<i64: 8, 1>}, {pipeline_mode = #tpu.pipeline_mode<synchronous>, transform_indices = @transform_3, window_bounds = array<i64: 8, 72>}, {pipeline_mode = #tpu.pipeline_mode<synchronous>, transform_indices = @transform_4, window_bounds = array<i64: 8, 1>}, {transform_indices = @transform_5, window_bounds = array<i64: 1, 8, 256>}]} {
    %c0 = arith.constant 0 : index
    %c0_0 = arith.constant 0 : index
    %c0_1 = arith.constant 0 : index
    %0 = vector.load %arg1[%c0, %c0_0, %c0_1] : memref<1x8x256xf32, #tpu.memory_space<vmem>>, vector<1x8x256xf32>
    %1 = vector.shape_cast %0 : vector<1x8x256xf32> to vector<8x256xf32>
    %2 = tpu.iota {dimensions = array<i32: 1>} : vector<1x256xi32>
    %c15_i32 = arith.constant 15 : i32
    %3 = vector.broadcast %c15_i32 : i32 to vector<1x256xi32>
    %4 = arith.andi %2, %3 : vector<1x256xi32>
    %c16_i32 = arith.constant 16 : i32
    %5 = vector.broadcast %c16_i32 : i32 to vector<1x256xi32>
    %6 = arith.cmpi sge, %2, %5 : vector<1x256xi32>
    %c240_i32 = arith.constant 240 : i32
    %7 = vector.broadcast %c240_i32 : i32 to vector<1x256xi32>
    %8 = arith.cmpi slt, %2, %7 : vector<1x256xi32>
    %c1_i32 = arith.constant 1 : i32
    %9 = vector.broadcast %c1_i32 : i32 to vector<1x256xi32>
    %10 = arith.cmpi sge, %4, %9 : vector<1x256xi32>
    %c15_i32_2 = arith.constant 15 : i32
    %11 = vector.broadcast %c15_i32_2 : i32 to vector<1x256xi32>
    %12 = arith.cmpi slt, %4, %11 : vector<1x256xi32>
    %c0_3 = arith.constant 0 : index
    %c0_4 = arith.constant 0 : index
    %13 = vector.load %arg3[%c0_3, %c0_4] : memref<8x1xf32, #tpu.memory_space<vmem>>, vector<8x1xf32>
    %14 = vector.shape_cast %13 : vector<8x1xf32> to vector<8x1xf32>
    %15 = vector.broadcast %14 : vector<8x1xf32> to vector<8x256xf32>
    %c0_5 = arith.constant 0 : index
    %c0_6 = arith.constant 0 : index
    %16 = vector.load %arg5[%c0_5, %c0_6] : memref<8x1xf32, #tpu.memory_space<vmem>>, vector<8x1xf32>
    %17 = vector.shape_cast %16 : vector<8x1xf32> to vector<8x1xf32>
    %18 = vector.broadcast %17 : vector<8x1xf32> to vector<8x256xf32>
    %c17_i32 = arith.constant 17 : i32
    %19 = tpu.dynamic_rotate %1 by %c17_i32 dim 1 : vector<8x256xf32>, i32 -> vector<8x256xf32>
    %20 = arith.andi %6, %10 : vector<1x256xi1>
    %cst = arith.constant 0.000000e+00 : f32
    %21 = vector.shape_cast %20 : vector<1x256xi1> to vector<1x256xi1>
    %22 = vector.broadcast %21 : vector<1x256xi1> to vector<8x256xi1>
    %23 = vector.broadcast %cst : f32 to vector<8x256xf32>
    %24 = arith.select %22, %19, %23 : vector<8x256xi1>, vector<8x256xf32>
    %c0_7 = arith.constant 0 : index
    %c0_8 = arith.constant 0 : index
    %25 = vector.load %arg7[%c0_7, %c0_8] : memref<72x256xf32, #tpu.memory_space<vmem>>, vector<8x256xf32>
    tpu.vector_store %arg7[%c0_7, %c0_8], %24 {strides = array<i32>} : memref<72x256xf32, #tpu.memory_space<vmem>>, vector<8x256xf32>,
    %c16_i32_9 = arith.constant 16 : i32
    %26 = tpu.dynamic_rotate %1 by %c16_i32_9 dim 1 : vector<8x256xf32>, i32 -> vector<8x256xf32>
    %cst_10 = arith.constant 0.000000e+00 : f32
    %27 = vector.shape_cast %6 : vector<1x256xi1> to vector<1x256xi1>
    %28 = vector.broadcast %27 : vector<1x256xi1> to vector<8x256xi1>
    %29 = vector.broadcast %cst_10 : f32 to vector<8x256xf32>
    %30 = arith.select %28, %26, %29 : vector<8x256xi1>, vector<8x256xf32>
    %c8 = arith.constant 8 : index
    %c0_11 = arith.constant 0 : index
    %31 = vector.load %arg7[%c8, %c0_11] : memref<72x256xf32, #tpu.memory_space<vmem>>, vector<8x256xf32>
    tpu.vector_store %arg7[%c8, %c0_11], %30 {strides = array<i32>} : memref<72x256xf32, #tpu.memory_space<vmem>>, vector<8x256xf32>,
    %c15_i32_12 = arith.constant 15 : i32
    %32 = tpu.dynamic_rotate %1 by %c15_i32_12 dim 1 : vector<8x256xf32>, i32 -> vector<8x256xf32>
    %33 = arith.andi %6, %12 : vector<1x256xi1>
    %cst_13 = arith.constant 0.000000e+00 : f32
    %34 = vector.shape_cast %33 : vector<1x256xi1> to vector<1x256xi1>
    %35 = vector.broadcast %34 : vector<1x256xi1> to vector<8x256xi1>
    %36 = vector.broadcast %cst_13 : f32 to vector<8x256xf32>
    %37 = arith.select %35, %32, %36 : vector<8x256xi1>, vector<8x256xf32>
    %c16 = arith.constant 16 : index
    %c0_14 = arith.constant 0 : index
    %38 = vector.load %arg7[%c16, %c0_14] : memref<72x256xf32, #tpu.memory_space<vmem>>, vector<8x256xf32>
    tpu.vector_store %arg7[%c16, %c0_14], %37 {strides = array<i32>} : memref<72x256xf32, #tpu.memory_space<vmem>>, vector<8x256xf32>,
    %c1_i32_15 = arith.constant 1 : i32
    %39 = tpu.dynamic_rotate %1 by %c1_i32_15 dim 1 : vector<8x256xf32>, i32 -> vector<8x256xf32>
    %cst_16 = arith.constant 0.000000e+00 : f32
    %40 = vector.shape_cast %10 : vector<1x256xi1> to vector<1x256xi1>
    %41 = vector.broadcast %40 : vector<1x256xi1> to vector<8x256xi1>
    %42 = vector.broadcast %cst_16 : f32 to vector<8x256xf32>
    %43 = arith.select %41, %39, %42 : vector<8x256xi1>, vector<8x256xf32>
    %c24 = arith.constant 24 : index
    %c0_17 = arith.constant 0 : index
    %44 = vector.load %arg7[%c24, %c0_17] : memref<72x256xf32, #tpu.memory_space<vmem>>, vector<8x256xf32>
    tpu.vector_store %arg7[%c24, %c0_17], %43 {strides = array<i32>} : memref<72x256xf32, #tpu.memory_space<vmem>>, vector<8x256xf32>,
    %c32 = arith.constant 32 : index
    %c0_18 = arith.constant 0 : index
    %45 = vector.load %arg7[%c32, %c0_18] : memref<72x256xf32, #tpu.memory_space<vmem>>, vector<8x256xf32>
    tpu.vector_store %arg7[%c32, %c0_18], %1 {strides = array<i32>} : memref<72x256xf32, #tpu.memory_space<vmem>>, vector<8x256xf32>,
    %c255_i32 = arith.constant 255 : i32
    %46 = tpu.dynamic_rotate %1 by %c255_i32 dim 1 : vector<8x256xf32>, i32 -> vector<8x256xf32>
    %cst_19 = arith.constant 0.000000e+00 : f32
    %47 = vector.shape_cast %12 : vector<1x256xi1> to vector<1x256xi1>
    %48 = vector.broadcast %47 : vector<1x256xi1> to vector<8x256xi1>
    %49 = vector.broadcast %cst_19 : f32 to vector<8x256xf32>
    %50 = arith.select %48, %46, %49 : vector<8x256xi1>, vector<8x256xf32>
    %c40 = arith.constant 40 : index
    %c0_20 = arith.constant 0 : index
    %51 = vector.load %arg7[%c40, %c0_20] : memref<72x256xf32, #tpu.memory_space<vmem>>, vector<8x256xf32>
    tpu.vector_store %arg7[%c40, %c0_20], %50 {strides = array<i32>} : memref<72x256xf32, #tpu.memory_space<vmem>>, vector<8x256xf32>,
    %c241_i32 = arith.constant 241 : i32
    %52 = tpu.dynamic_rotate %1 by %c241_i32 dim 1 : vector<8x256xf32>, i32 -> vector<8x256xf32>
    %53 = arith.andi %8, %10 : vector<1x256xi1>
    %cst_21 = arith.constant 0.000000e+00 : f32
    %54 = vector.shape_cast %53 : vector<1x256xi1> to vector<1x256xi1>
    %55 = vector.broadcast %54 : vector<1x256xi1> to vector<8x256xi1>
    %56 = vector.broadcast %cst_21 : f32 to vector<8x256xf32>
    %57 = arith.select %55, %52, %56 : vector<8x256xi1>, vector<8x256xf32>
    %c48 = arith.constant 48 : index
    %c0_22 = arith.constant 0 : index
    %58 = vector.load %arg7[%c48, %c0_22] : memref<72x256xf32, #tpu.memory_space<vmem>>, vector<8x256xf32>
    tpu.vector_store %arg7[%c48, %c0_22], %57 {strides = array<i32>} : memref<72x256xf32, #tpu.memory_space<vmem>>, vector<8x256xf32>,
    %c240_i32_23 = arith.constant 240 : i32
    %59 = tpu.dynamic_rotate %1 by %c240_i32_23 dim 1 : vector<8x256xf32>, i32 -> vector<8x256xf32>
    %cst_24 = arith.constant 0.000000e+00 : f32
    %60 = vector.shape_cast %8 : vector<1x256xi1> to vector<1x256xi1>
    %61 = vector.broadcast %60 : vector<1x256xi1> to vector<8x256xi1>
    %62 = vector.broadcast %cst_24 : f32 to vector<8x256xf32>
    %63 = arith.select %61, %59, %62 : vector<8x256xi1>, vector<8x256xf32>
    %c56 = arith.constant 56 : index
    %c0_25 = arith.constant 0 : index
    %64 = vector.load %arg7[%c56, %c0_25] : memref<72x256xf32, #tpu.memory_space<vmem>>, vector<8x256xf32>
    tpu.vector_store %arg7[%c56, %c0_25], %63 {strides = array<i32>} : memref<72x256xf32, #tpu.memory_space<vmem>>, vector<8x256xf32>,
    %c239_i32 = arith.constant 239 : i32
    %65 = tpu.dynamic_rotate %1 by %c239_i32 dim 1 : vector<8x256xf32>, i32 -> vector<8x256xf32>
    %66 = arith.andi %8, %12 : vector<1x256xi1>
    %cst_26 = arith.constant 0.000000e+00 : f32
    %67 = vector.shape_cast %66 : vector<1x256xi1> to vector<1x256xi1>
    %68 = vector.broadcast %67 : vector<1x256xi1> to vector<8x256xi1>
    %69 = vector.broadcast %cst_26 : f32 to vector<8x256xf32>
    %70 = arith.select %68, %65, %69 : vector<8x256xi1>, vector<8x256xf32>
    %c64 = arith.constant 64 : index
    %c0_27 = arith.constant 0 : index
    %71 = vector.load %arg7[%c64, %c0_27] : memref<72x256xf32, #tpu.memory_space<vmem>>, vector<8x256xf32>
    tpu.vector_store %arg7[%c64, %c0_27], %70 {strides = array<i32>} : memref<72x256xf32, #tpu.memory_space<vmem>>, vector<8x256xf32>,
    %c0_28 = arith.constant 0 : index
    %c0_29 = arith.constant 0 : index
    %72 = vector.load %arg2[%c0_28, %c0_29] : memref<8x72xf32, #tpu.memory_space<vmem>>, vector<8x72xf32>
    %c0_30 = arith.constant 0 : index
    %c0_31 = arith.constant 0 : index
    %73 = vector.load %arg7[%c0_30, %c0_31] : memref<72x256xf32, #tpu.memory_space<vmem>>, vector<72x256xf32>
    %cst_32 = arith.constant dense<0.000000e+00> : vector<8x256xf32>
    %74 = tpu.matmul %72, %73, %cst_32 {dimension_numbers = #tpu.dot_dimension_numbers<[1], [0], [0], [1], [0, 0, 1, 1], [], []>} : vector<8x72xf32>, vector<72x256xf32>, vector<8x256xf32> -> vector<8x256xf32>
    %75 = arith.addf %15, %74 : vector<8x256xf32>
    %76 = arith.addf %18, %1 : vector<8x256xf32>
    %c17_i32_33 = arith.constant 17 : i32
    %77 = tpu.dynamic_rotate %75 by %c17_i32_33 dim 1 : vector<8x256xf32>, i32 -> vector<8x256xf32>
    %78 = arith.andi %6, %10 : vector<1x256xi1>
    %cst_34 = arith.constant 0.000000e+00 : f32
    %79 = vector.shape_cast %78 : vector<1x256xi1> to vector<1x256xi1>
    %80 = vector.broadcast %79 : vector<1x256xi1> to vector<8x256xi1>
    %81 = vector.broadcast %cst_34 : f32 to vector<8x256xf32>
    %82 = arith.select %80, %77, %81 : vector<8x256xi1>, vector<8x256xf32>
    %c0_35 = arith.constant 0 : index
    %c0_36 = arith.constant 0 : index
    %83 = vector.load %arg7[%c0_35, %c0_36] : memref<72x256xf32, #tpu.memory_space<vmem>>, vector<8x256xf32>
    tpu.vector_store %arg7[%c0_35, %c0_36], %82 {strides = array<i32>} : memref<72x256xf32, #tpu.memory_space<vmem>>, vector<8x256xf32>,
    %c16_i32_37 = arith.constant 16 : i32
    %84 = tpu.dynamic_rotate %75 by %c16_i32_37 dim 1 : vector<8x256xf32>, i32 -> vector<8x256xf32>
    %cst_38 = arith.constant 0.000000e+00 : f32
    %85 = vector.shape_cast %6 : vector<1x256xi1> to vector<1x256xi1>
    %86 = vector.broadcast %85 : vector<1x256xi1> to vector<8x256xi1>
    %87 = vector.broadcast %cst_38 : f32 to vector<8x256xf32>
    %88 = arith.select %86, %84, %87 : vector<8x256xi1>, vector<8x256xf32>
    %c8_39 = arith.constant 8 : index
    %c0_40 = arith.constant 0 : index
    %89 = vector.load %arg7[%c8_39, %c0_40] : memref<72x256xf32, #tpu.memory_space<vmem>>, vector<8x256xf32>
    tpu.vector_store %arg7[%c8_39, %c0_40], %88 {strides = array<i32>} : memref<72x256xf32, #tpu.memory_space<vmem>>, vector<8x256xf32>,
    %c15_i32_41 = arith.constant 15 : i32
    %90 = tpu.dynamic_rotate %75 by %c15_i32_41 dim 1 : vector<8x256xf32>, i32 -> vector<8x256xf32>
    %91 = arith.andi %6, %12 : vector<1x256xi1>
    %cst_42 = arith.constant 0.000000e+00 : f32
    %92 = vector.shape_cast %91 : vector<1x256xi1> to vector<1x256xi1>
    %93 = vector.broadcast %92 : vector<1x256xi1> to vector<8x256xi1>
    %94 = vector.broadcast %cst_42 : f32 to vector<8x256xf32>
    %95 = arith.select %93, %90, %94 : vector<8x256xi1>, vector<8x256xf32>
    %c16_43 = arith.constant 16 : index
    %c0_44 = arith.constant 0 : index
    %96 = vector.load %arg7[%c16_43, %c0_44] : memref<72x256xf32, #tpu.memory_space<vmem>>, vector<8x256xf32>
    tpu.vector_store %arg7[%c16_43, %c0_44], %95 {strides = array<i32>} : memref<72x256xf32, #tpu.memory_space<vmem>>, vector<8x256xf32>,
    %c1_i32_45 = arith.constant 1 : i32
    %97 = tpu.dynamic_rotate %75 by %c1_i32_45 dim 1 : vector<8x256xf32>, i32 -> vector<8x256xf32>
    %cst_46 = arith.constant 0.000000e+00 : f32
    %98 = vector.shape_cast %10 : vector<1x256xi1> to vector<1x256xi1>
    %99 = vector.broadcast %98 : vector<1x256xi1> to vector<8x256xi1>
    %100 = vector.broadcast %cst_46 : f32 to vector<8x256xf32>
    %101 = arith.select %99, %97, %100 : vector<8x256xi1>, vector<8x256xf32>
    %c24_47 = arith.constant 24 : index
    %c0_48 = arith.constant 0 : index
    %102 = vector.load %arg7[%c24_47, %c0_48] : memref<72x256xf32, #tpu.memory_space<vmem>>, vector<8x256xf32>
    tpu.vector_store %arg7[%c24_47, %c0_48], %101 {strides = array<i32>} : memref<72x256xf32, #tpu.memory_space<vmem>>, vector<8x256xf32>,
    %c32_49 = arith.constant 32 : index
    %c0_50 = arith.constant 0 : index
    %103 = vector.load %arg7[%c32_49, %c0_50] : memref<72x256xf32, #tpu.memory_space<vmem>>, vector<8x256xf32>
    tpu.vector_store %arg7[%c32_49, %c0_50], %75 {strides = array<i32>} : memref<72x256xf32, #tpu.memory_space<vmem>>, vector<8x256xf32>,
    %c255_i32_51 = arith.constant 255 : i32
    %104 = tpu.dynamic_rotate %75 by %c255_i32_51 dim 1 : vector<8x256xf32>, i32 -> vector<8x256xf32>
    %cst_52 = arith.constant 0.000000e+00 : f32
    %105 = vector.shape_cast %12 : vector<1x256xi1> to vector<1x256xi1>
    %106 = vector.broadcast %105 : vector<1x256xi1> to vector<8x256xi1>
    %107 = vector.broadcast %cst_52 : f32 to vector<8x256xf32>
    %108 = arith.select %106, %104, %107 : vector<8x256xi1>, vector<8x256xf32>
    %c40_53 = arith.constant 40 : index
    %c0_54 = arith.constant 0 : index
    %109 = vector.load %arg7[%c40_53, %c0_54] : memref<72x256xf32, #tpu.memory_space<vmem>>, vector<8x256xf32>
    tpu.vector_store %arg7[%c40_53, %c0_54], %108 {strides = array<i32>} : memref<72x256xf32, #tpu.memory_space<vmem>>, vector<8x256xf32>,
    %c241_i32_55 = arith.constant 241 : i32
    %110 = tpu.dynamic_rotate %75 by %c241_i32_55 dim 1 : vector<8x256xf32>, i32 -> vector<8x256xf32>
    %111 = arith.andi %8, %10 : vector<1x256xi1>
    %cst_56 = arith.constant 0.000000e+00 : f32
    %112 = vector.shape_cast %111 : vector<1x256xi1> to vector<1x256xi1>
    %113 = vector.broadcast %112 : vector<1x256xi1> to vector<8x256xi1>
    %114 = vector.broadcast %cst_56 : f32 to vector<8x256xf32>
    %115 = arith.select %113, %110, %114 : vector<8x256xi1>, vector<8x256xf32>
    %c48_57 = arith.constant 48 : index
    %c0_58 = arith.constant 0 : index
    %116 = vector.load %arg7[%c48_57, %c0_58] : memref<72x256xf32, #tpu.memory_space<vmem>>, vector<8x256xf32>
    tpu.vector_store %arg7[%c48_57, %c0_58], %115 {strides = array<i32>} : memref<72x256xf32, #tpu.memory_space<vmem>>, vector<8x256xf32>,
    %c240_i32_59 = arith.constant 240 : i32
    %117 = tpu.dynamic_rotate %75 by %c240_i32_59 dim 1 : vector<8x256xf32>, i32 -> vector<8x256xf32>
    %cst_60 = arith.constant 0.000000e+00 : f32
    %118 = vector.shape_cast %8 : vector<1x256xi1> to vector<1x256xi1>
    %119 = vector.broadcast %118 : vector<1x256xi1> to vector<8x256xi1>
    %120 = vector.broadcast %cst_60 : f32 to vector<8x256xf32>
    %121 = arith.select %119, %117, %120 : vector<8x256xi1>, vector<8x256xf32>
    %c56_61 = arith.constant 56 : index
    %c0_62 = arith.constant 0 : index
    %122 = vector.load %arg7[%c56_61, %c0_62] : memref<72x256xf32, #tpu.memory_space<vmem>>, vector<8x256xf32>
    tpu.vector_store %arg7[%c56_61, %c0_62], %121 {strides = array<i32>} : memref<72x256xf32, #tpu.memory_space<vmem>>, vector<8x256xf32>,
    %c239_i32_63 = arith.constant 239 : i32
    %123 = tpu.dynamic_rotate %75 by %c239_i32_63 dim 1 : vector<8x256xf32>, i32 -> vector<8x256xf32>
    %124 = arith.andi %8, %12 : vector<1x256xi1>
    %cst_64 = arith.constant 0.000000e+00 : f32
    %125 = vector.shape_cast %124 : vector<1x256xi1> to vector<1x256xi1>
    %126 = vector.broadcast %125 : vector<1x256xi1> to vector<8x256xi1>
    %127 = vector.broadcast %cst_64 : f32 to vector<8x256xf32>
    %128 = arith.select %126, %123, %127 : vector<8x256xi1>, vector<8x256xf32>
    %c64_65 = arith.constant 64 : index
    %c0_66 = arith.constant 0 : index
    %129 = vector.load %arg7[%c64_65, %c0_66] : memref<72x256xf32, #tpu.memory_space<vmem>>, vector<8x256xf32>
    tpu.vector_store %arg7[%c64_65, %c0_66], %128 {strides = array<i32>} : memref<72x256xf32, #tpu.memory_space<vmem>>, vector<8x256xf32>,
    %c0_67 = arith.constant 0 : index
    %c0_68 = arith.constant 0 : index
    %130 = vector.load %arg4[%c0_67, %c0_68] : memref<8x72xf32, #tpu.memory_space<vmem>>, vector<8x72xf32>
    %c0_69 = arith.constant 0 : index
    %c0_70 = arith.constant 0 : index
    %131 = vector.load %arg7[%c0_69, %c0_70] : memref<72x256xf32, #tpu.memory_space<vmem>>, vector<72x256xf32>
    %cst_71 = arith.constant dense<0.000000e+00> : vector<8x256xf32>
    %132 = tpu.matmul %130, %131, %cst_71 {dimension_numbers = #tpu.dot_dimension_numbers<[1], [0], [0], [1], [0, 0, 1, 1], [], []>} : vector<8x72xf32>, vector<72x256xf32>, vector<8x256xf32> -> vector<8x256xf32>
    %133 = arith.addf %76, %132 : vector<8x256xf32>
    %c0_72 = arith.constant 0 : index
    %c0_73 = arith.constant 0 : index
    %c0_74 = arith.constant 0 : index
    %134 = vector.load %arg6[%c0_72, %c0_73, %c0_74] : memref<1x8x256xf32, #tpu.memory_space<vmem>>, vector<1x8x256xf32>
    %135 = vector.shape_cast %134 : vector<1x8x256xf32> to vector<8x256xf32>
    %136 = vector.shape_cast %133 : vector<8x256xf32> to vector<1x8x256xf32>
    tpu.vector_store %arg6[%c0_72, %c0_73, %c0_74], %136 {strides = array<i32>} : memref<1x8x256xf32, #tpu.memory_space<vmem>>, vector<1x8x256xf32>,
    return
  }
  func.func @transform_0(%arg0: i32) -> (i32, i32, i32) {
    %c0_i32 = arith.constant 0 : i32
    %c0_i32_0 = arith.constant 0 : i32
    %c0_i32_1 = arith.constant 0 : i32
    return %arg0, %c0_i32, %c0_i32_0 : i32, i32, i32
  }
  func.func @transform_1(%arg0: i32) -> (i32, i32) {
    %c0_i32 = arith.constant 0 : i32
    %c0_i32_0 = arith.constant 0 : i32
    %c0_i32_1 = arith.constant 0 : i32
    return %c0_i32, %c0_i32_0 : i32, i32
  }
  func.func @transform_2(%arg0: i32) -> (i32, i32) {
    %c0_i32 = arith.constant 0 : i32
    %c0_i32_0 = arith.constant 0 : i32
    %c0_i32_1 = arith.constant 0 : i32
    return %c0_i32, %c0_i32_0 : i32, i32
  }
  func.func @transform_3(%arg0: i32) -> (i32, i32) {
    %c0_i32 = arith.constant 0 : i32
    %c0_i32_0 = arith.constant 0 : i32
    %c0_i32_1 = arith.constant 0 : i32
    return %c0_i32, %c0_i32_0 : i32, i32
  }
  func.func @transform_4(%arg0: i32) -> (i32, i32) {
    %c0_i32 = arith.constant 0 : i32
    %c0_i32_0 = arith.constant 0 : i32
    %c0_i32_1 = arith.constant 0 : i32
    return %c0_i32, %c0_i32_0 : i32, i32
  }
  func.func @transform_5(%arg0: i32) -> (i32, i32, i32) {
    %c0_i32 = arith.constant 0 : i32
    %c0_i32_0 = arith.constant 0 : i32
    %c0_i32_1 = arith.constant 0 : i32
    return %arg0, %c0_i32, %c0_i32_0 : i32, i32, i32
  }
}

</mosaic_0001>

<bundles_post_ra>
// kernel: tpu_custom_call.1
= control target key start
LH: loop header
LB: loop body
LE: loop exit
PB: predicated region body
PF: predicated region fallthrough
CT: control target
= control target key end

     0   :  { %10 = vsyncpa [#allocation4], 0  ;;  %s1028_s0 = inlined_call_operand.vmem [shape: f32[1,8,256], index: 0, kind: input, shape index: {}]   ;;  %s1029_s1 = inlined_call_operand.hbm [shape: f32[8,72], index: 1, kind: input, shape index: {}]   ;;  %s1030_s2 = inlined_call_operand.vmem [shape: f32[8,1], index: 2, kind: input, shape index: {}]   ;;  %s1031_s3 = inlined_call_operand.vmem [shape: f32[8,72], index: 3, kind: input, shape index: {}]   ;;  %s1032_s4 = inlined_call_operand.vmem [shape: f32[8,1], index: 4, kind: input, shape index: {}]   ;;  %s1033_s5 = inlined_call_operand.hbm [shape: f32[1,8,256], index: 5, kind: output, shape index: {}]  }
   0x1   :  { %11 = vsyncpa [#allocation5], 0  ;;  %s693_s18 = smov [#allocation3]   ;;  %s645_s22 = scalar_lea.hbm %s1029_s1, 128 }
   0x2   :  { %s20_s19 = sshll.u32 %s693_s18, 4  ;;  %p646_p0 = scmp.ne.s32.totalorder %s1029_s1, %s645_s22  ;;  %s21_s19 = int_to_ptr.vmem [resolvable:$true] %s20_s19 }
   0x3   :  { %p649_p1 = scmp.lt.u32.totalorder %s645_s22, %s1029_s1 }
   0x5   :  { %p651_p2 = pnand %p649_p1, %p646_p0 }
   0x7   :  { %654 = shalt.err (!%p651_p2)
}
   0x8   :  { %s655_s27 = scalar_lea.vmem %s21_s19, 128  ;;  %p660_p4 = scmp.lt.s32.totalorder %s21_s19, %s21_s19 }
   0x9   :  { %p656_p3 = scmp.ne.s32.totalorder %s21_s19, %s655_s27  ;;  %p661_p5 = scmp.lt.s32.totalorder %s655_s27, %s655_s27 }
   0xb   :  { %p662_p6 = por %p661_p5, %p660_p4 }
   0xd   :  { %p663_p7 = pnand %p662_p6, %p656_p3 }
   0xf   :  { %666 = shalt.err (!%p663_p7)
}
  0x10   :  { %23 = dma.hbm_to_vmem [thread:$0]  %s1029_s1, 128, %s21_s19, [#allocation4]  }
  0x11   :  { %689 = dma.done.wait [#allocation4], 128  }
  0x12   :  { %690 = vsyncadd [#allocation4], 4294967168  ;;  %v751_v0 = vld [vmem:[%s1028_s0] sm:$0xff]  ;;  %v756_v1 = vld [vmem:[%s1028_s0 + $0x8] sm:$0xff]  ;;  %s694_s9 = smov 15   ;;  %s695_s10 = smov 17   ;;  %v35_v6 = vlaneseq }
  0x13   :  { %v583_v2 = vpack.i.bf16 %v756_v1, %v751_v0  ;;  %s696_s1 = smov 1   ;;  %s697_s11 = smov 16   ;;  %v702_v3 = vmov 0.0   ;;  %v48_v4 = vld [vmem:[%s1030_s2] sm:$0xff]  ;;  %v703_v5 = vmov 0   ;;  %vm704_vm11 = vmmov 1  }
  0x14   :  { %s698_s12 = smov 127   ;;  %s699_s0 = smov 113   ;;  %277 = vmatprep.mubr.f32.mxu0 %v702_v3  ;;  %456 = vmatprep.mubr.f32.mxu1 %v702_v3  ;;  %v774_v7 = vand.u32 127, %v35_v6  ;;  %v370_v61 = vld [vmem:[%s1031_s3] sm:$0xff] }
  0x15   :  { %584 = vrot.lane.b32.xlu1 %v583_v2, %s694_s9  ;;  %574 = vrot.lane.b32.xlu0 %v583_v2, %s695_s10  ;;  %s700_s13 = smov 112   ;;  %s701_s14 = smov 111  }
  0x16   :  { %608 = vset.pattern.permute.xlu1 %v703_v5  ;;  %644 = vset.pattern.permute.xlu0 %v703_v5  ;;  %v777_v8 = vadd.s32 128, %v774_v7  ;;  %v38_v9 = vand.u32 15, %v774_v7  ;;  %vm40_vm0 = vcmp.ge.s32.totalorder %v774_v7, 16  ;;  %vm1034_vm2 = vcmp.lt.s32.totalorder %v774_v7, 15  ;;  %s705_s19 = smov [#allocation6]  }
  0x17   :  { %vm1035_vm3 = vcmp.lt.s32.totalorder %v774_v7, 1  ;;  %vm64_vm4 = vcmp.lt.s32.totalorder %v774_v7, 17  ;;  %vm1038_vm7 = vcmp.lt.s32.totalorder %v774_v7, 16  ;;  %vm1036_vm13 = vcmp.lt.s32.totalorder %v774_v7, 127  ;;  %s473_s20 = sshll.u32 %s705_s19, 4  ;;  %s474_s20 = int_to_ptr.vmem [resolvable:$true] %s473_s20 }
  0x18   :  { %v39_v12 = vand.u32 15, %v777_v8  ;;  %vm782_vm1 = vcmp.ge.s32.totalorder %v38_v9, 1  ;;  %vm812_vm10 = vcmp.lt.s32.totalorder %v38_v9, 15  ;;  %s667_s3 = scalar_lea.vmem %s474_s20, 256  ;;  %p672_p9 = scmp.lt.s32.totalorder %s474_s20, %s474_s20 }
  0x19   :  { %589 = vrot.lane.b32.xlu1 %v583_v2, %s696_s1  ;;  %579 = vrot.lane.b32.xlu0 %v583_v2, %s697_s11  ;;  %vm67_vm5 = vmand %vm40_vm0, %vm782_vm1  ;;  %p668_p8 = scmp.ne.s32.totalorder %s474_s20, %s667_s3  ;;  %p673_p10 = scmp.lt.s32.totalorder %s667_s3, %s667_s3 }
  0x1a   :  { %vm793_vm6 = vcmp.ge.s32.totalorder %v39_v12, 1  ;;  %vm798_vm8 = vcmp.lt.s32.totalorder %v39_v12, 15  ;;  %vm808_vm9 = vmpackc.low %vm40_vm0, %vm67_vm5  ;;  %vm1041_vm5 = vcmp.lt.s32.totalorder %v774_v7, 113 }
  0x1b   :  { %vm823_vm12 = vmpackc.low %vm704_vm11, %vm793_vm6  ;;  %p674_p11 = por %p673_p10, %p672_p9 }
  0x1c   :  { %vm1037_vm14 = vmpackc.low %vm793_vm6, %vm798_vm8 }
  0x1d   :  { %594 = vrot.lane.b32.xlu0 %v583_v2, %s698_s12  ;;  %599 = vrot.lane.b32.xlu1 %v583_v2, %s699_s0  ;;  %vm840_vm15 = vmand %vm40_vm0, %vm812_vm10  ;;  %vm43_vm0 = vcmp.lt.s32.totalorder %v777_v8, 240  ;;  %p675_p12 = pnand %p674_p11, %p668_p8 }
  0x21   :  { %604 = vrot.lane.b32.xlu0 %v583_v2, %s700_s13  ;;  %173 = vrot.lane.b32.xlu1 %v751_v0, %s701_s14 }
  0x25   :  { %175 = vrot.lane.b32.xlu0 %v756_v1, %s701_s14  ;;  %51 = vperm.xlu1 %608, %v48_v4  }
  0x87   :  { %v585_v10 = vpop.permute.xlu1 %584  ;;  %v575_v11 = vpop.permute.xlu0 %574 }
  0x88   :  { %v587_v14 = vunpack.i.h.bf16 %v585_v10  ;;  %v586_v15 = vunpack.i.l.bf16 %v585_v10  ;;  %v577_v16 = vunpack.i.h.bf16 %v575_v11  ;;  %v576_v17 = vunpack.i.l.bf16 %v575_v11  ;;  %v190_v10 = vld [vmem:[#allocation3] sm:$0xff] }
  0x8a   :  { %v97_v26 = vsel %vm1034_vm2, %v586_v15, %v587_v14  ;;  %v65_v27 = vsel %vm64_vm4, %v576_v17, %v577_v16  ;;  %v66_v33 = vsel %vm64_vm4, %v577_v16, %v576_v17  ;;  %v98_v44 = vsel %vm1034_vm2, %v587_v14, %v586_v15  ;;  %vm1039_vm2 = vmpackc.low %vm782_vm1, %vm840_vm15  ;;  %v54_v17 = vld [vmem:[%s1032_s4] sm:$0xff] }
  0x8b   :  { %v590_v18 = vpop.permute.xlu1 %589  ;;  %v580_v19 = vpop.permute.xlu0 %579 }
  0x8c   :  { %v592_v22 = vunpack.i.h.bf16 %v590_v18  ;;  %v591_v23 = vunpack.i.l.bf16 %v590_v18  ;;  %v582_v24 = vunpack.i.h.bf16 %v580_v19  ;;  %v581_v25 = vunpack.i.l.bf16 %v580_v19 }
  0x8e   :  { %v114_v30 = vsel %vm1035_vm3, %v591_v23, %v592_v22  ;;  %v82_v31 = vsel %vm1038_vm7, %v581_v25, %v582_v24  ;;  %v83_v34 = vsel %vm1038_vm7, %v582_v24, %v581_v25  ;;  %v115_v45 = vsel %vm1035_vm3, %v592_v22, %v591_v23  ;;  %vm899_vm7 = vmpackc.low %vm812_vm10, %vm704_vm11 }
  0x8f   :  { %v512_v35 = vpack.c.bf16 %v82_v31, %v65_v27  ;;  %v515_v36 = vpack.c.bf16 %v83_v34, %v66_v33  ;;  %v595_v37 = vpop.permute.xlu0 %594  ;;  %v600_v38 = vpop.permute.xlu1 %599  ;;  %v518_v46 = vpack.c.bf16 %v114_v30, %v97_v26  ;;  %vm1040_vm3 = vcmp.lt.s32.totalorder %v774_v7, 112 }
  0x90   :  { %v597_v39 = vunpack.i.h.bf16 %v595_v37  ;;  %v596_v40 = vunpack.i.l.bf16 %v595_v37  ;;  %v602_v42 = vunpack.i.h.bf16 %v600_v38  ;;  %v601_v43 = vunpack.i.l.bf16 %v600_v38 }
  0x91   :  { %514 = vmatprep.subr.msk.bf16.mxu0 %vm823_vm12, %v512_v35  ;;  %v521_v51 = vpack.c.bf16 %v115_v45, %v98_v44 }
  0x92   :  { %517 = vmatpush1.bf16.msk.msra.mxu0 %vm808_vm9, %v515_v36  ;;  %v132_v47 = vsel %vm1036_vm13, %v597_v39, %v596_v40  ;;  %v131_v48 = vsel %vm1036_vm13, %v596_v40, %v597_v39  ;;  %v147_v52 = vsel %vm1041_vm5, %v602_v42, %v601_v43  ;;  %vm874_vm13 = vmpackc.low %vm798_vm8, %vm704_vm11  ;;  %v146_v58 = vsel %vm1041_vm5, %v601_v43, %v602_v42 }
  0x93   :  { %v524_v49 = vpack.c.bf16 %v132_v47, %v756_v1  ;;  %520 = vmatprep.subr.msk.bf16.mxu0 %vm1037_vm14, %v518_v46  ;;  %v605_v50 = vpop.permute.xlu0 %604  ;;  %vm149_vm14 = vmand %vm43_vm0, %vm793_vm6  ;;  %v527_v56 = vpack.c.bf16 %v131_v48, %v751_v0  ;;  %v174_v63 = vpop.permute.xlu1 %173 }
  0x94   :  { %v607_v53 = vunpack.i.h.bf16 %v605_v50  ;;  %v606_v54 = vunpack.i.l.bf16 %v605_v50  ;;  %vm917_vm5 = vmpackc.low %vm704_vm11, %vm782_vm1  ;;  %vm1042_vm11 = vcmask 588800  }
  0x96   :  { %523 = vmatpush1.bf16.msk.msra.mxu0 %vm1039_vm2, %v521_v51  ;;  %v164_v57 = vsel %vm1040_vm3, %v607_v53, %v606_v54  ;;  %v163_v59 = vsel %vm1040_vm3, %v606_v54, %v607_v53  ;;  %vm905_vm2 = vmpackc.low %vm43_vm0, %vm149_vm14  ;;  %vm1043_vm3 = vcmp.lt.s32.totalorder %v774_v7, 111 }
  0x97   :  { %v530_v60 = vpack.c.bf16 %v164_v57, %v147_v52  ;;  %526 = vmatprep.subr.msk.bf16.mxu0 %vm874_vm13, %v524_v49  ;;  %v176_v2 = vpop.permute.xlu0 %175  ;;  %v533_v3 = vpack.c.bf16 %v163_v59, %v146_v58  ;;  %vm927_vm14 = vmand %vm43_vm0, %vm798_vm8  ;;  %vm1068_vm0 = vcmp.lt.s32.totalorder %v774_v7, 16 }
  0x98   :  { %v179_v5 = vsel %vm1043_vm3, %v176_v2, %v174_v63  ;;  %v178_v9 = vsel %vm1043_vm3, %v174_v63, %v176_v2  ;;  %vm1070_vm3 = vcmp.lt.s32.totalorder %v774_v7, 1 }
  0x9a   :  { %529 = vmatpush1.bf16.msk.msra.mxu0 %vm899_vm7, %v527_v56 }
  0x9b   :  { %532 = vmatprep.subr.msk.bf16.mxu0 %vm905_vm2, %v530_v60 }
  0x9e   :  { %535 = vmatpush1.bf16.msk.msra.mxu0 %vm917_vm5, %v533_v3 }
  0x9f   :  { %496 = vmatprep.subr.msk.mxu0 %vm927_vm14, %v179_v5 }
  0xa2   :  { %497 = vmatpush1.msk.msra.mxu0 %vm812_vm10, %v178_v9 }
  0xa3   :  { %482 = vmatmul.mubr.msk.f32.vlgmr.msra.gmra.mrb[0].mxu0 %vm1042_vm11, %v190_v10  ;;  %vm1069_vm11 = vmmov %vm1068_vm0 }
  0xa4   :  { %v52_v8 = vpop.permute.xlu1 %51 }
 0x176   :  { %v279_v11 = vpop.f32.mrb[0].mxu0 }
 0x177   :  { %v284_v12 = vadd.f32 %v279_v11, %v52_v8  ;;  %v281_v14 = vpop.f32.mrb[1].mxu0 }
 0x178   :  { %v285_v15 = vadd.f32 %v281_v14, %v52_v8 }
 0x17a   :  { %v614_v16 = vpack.i.bf16 %v285_v15, %v284_v12 }
 0x17c   :  { %615 = vrot.lane.b32.xlu1 %v614_v16, %s697_s11  ;;  %610 = vrot.lane.b32.xlu0 %v614_v16, %s695_s10 }
 0x180   :  { %625 = vrot.lane.b32.xlu1 %v614_v16, %s696_s1  ;;  %620 = vrot.lane.b32.xlu0 %v614_v16, %s694_s9 }
 0x184   :  { %635 = vrot.lane.b32.xlu1 %v614_v16, %s699_s0  ;;  %630 = vrot.lane.b32.xlu0 %v614_v16, %s698_s12 }
 0x188   :  { %360 = vrot.lane.b32.xlu1 %v284_v12, %s701_s14  ;;  %640 = vrot.lane.b32.xlu0 %v614_v16, %s700_s13 }
 0x18c   :  { %57 = vperm.xlu1 %608, %v54_v17   ;;  %362 = vrot.lane.b32.xlu0 %v285_v15, %s701_s14 }
 0x1ee   :  { %v616_v18 = vpop.permute.xlu1 %615  ;;  %v611_v19 = vpop.permute.xlu0 %610 }
 0x1ef   :  { %v618_v22 = vunpack.i.h.bf16 %v616_v18  ;;  %v617_v23 = vunpack.i.l.bf16 %v616_v18  ;;  %v613_v24 = vunpack.i.h.bf16 %v611_v19  ;;  %v612_v25 = vunpack.i.l.bf16 %v611_v19 }
 0x1f1   :  { %v292_v26 = vsel %vm64_vm4, %v612_v25, %v613_v24  ;;  %v302_v27 = vsel %vm1068_vm0, %v617_v23, %v618_v22  ;;  %v293_v30 = vsel %vm64_vm4, %v613_v24, %v612_v25  ;;  %v303_v31 = vsel %vm1069_vm11, %v618_v22, %v617_v23  ;;  %vm1071_vm0 = vmmov %vm1070_vm3 }
 0x1f2   :  { %v626_v33 = vpop.permute.xlu1 %625  ;;  %v621_v34 = vpop.permute.xlu0 %620  ;;  %v536_v35 = vpack.c.bf16 %v302_v27, %v292_v26  ;;  %v539_v36 = vpack.c.bf16 %v303_v31, %v293_v30  ;;  %vm1072_vm4 = vcmp.lt.s32.totalorder %v774_v7, 15 }
 0x1f3   :  { %v628_v37 = vunpack.i.h.bf16 %v626_v33  ;;  %v627_v38 = vunpack.i.l.bf16 %v626_v33  ;;  %v623_v39 = vunpack.i.h.bf16 %v621_v34  ;;  %v622_v40 = vunpack.i.l.bf16 %v621_v34  ;;  %vm1073_vm11 = vmmov %vm1072_vm4 }
 0x1f4   :  { %538 = vmatprep.subr.msk.bf16.mxu1 %vm823_vm12, %v536_v35  ;;  %vm1075_vm12 = vcmp.lt.s32.totalorder %v774_v7, 127 }
 0x1f5   :  { %v322_v42 = vsel %vm1070_vm3, %v627_v38, %v628_v37  ;;  %v323_v43 = vsel %vm1071_vm0, %v628_v37, %v627_v38  ;;  %v312_v44 = vsel %vm1072_vm4, %v622_v40, %v623_v39  ;;  %v313_v45 = vsel %vm1073_vm11, %v623_v39, %v622_v40  ;;  %541 = vmatpush1.bf16.msk.msra.mxu1 %vm808_vm9, %v539_v36  ;;  %vm1074_vm3 = vmpackc.low %vm793_vm6, %vm798_vm8 }
 0x1f6   :  { %v542_v46 = vpack.c.bf16 %v322_v42, %v312_v44  ;;  %v545_v47 = vpack.c.bf16 %v323_v43, %v313_v45  ;;  %v636_v48 = vpop.permute.xlu1 %635  ;;  %v631_v32 = vpop.permute.xlu0 %630  ;;  %vm1076_vm0 = vmmov %vm1075_vm12  ;;  %vm1078_vm6 = vcmp.lt.s32.totalorder %v774_v7, 113  ;;  %vm1080_vm4 = vcmp.lt.s32.totalorder %v774_v7, 112 }
 0x1f7   :  { %v633_v49 = vunpack.i.h.bf16 %v631_v32  ;;  %v632_v50 = vunpack.i.l.bf16 %v631_v32  ;;  %v638_v51 = vunpack.i.h.bf16 %v636_v48  ;;  %v637_v52 = vunpack.i.l.bf16 %v636_v48  ;;  %vm1077_vm9 = vmpackc.low %vm782_vm1, %vm840_vm15 }
 0x1f8   :  { %544 = vmatprep.subr.msk.bf16.mxu1 %vm1074_vm3, %v542_v46  ;;  %vm1079_vm8 = vmmov %vm1078_vm6 }
 0x1f9   :  { %v334_v53 = vsel %vm1075_vm12, %v632_v50, %v633_v49  ;;  %v335_v28 = vsel %vm1076_vm0, %v633_v49, %v632_v50  ;;  %547 = vmatpush1.bf16.msk.msra.mxu1 %vm1077_vm9, %v545_v47  ;;  %v344_v58 = vsel %vm1078_vm6, %v637_v52, %v638_v51  ;;  %v345_v59 = vsel %vm1079_vm8, %v638_v51, %v637_v52  ;;  %vm1081_vm1 = vmmov %vm1080_vm4 }
 0x1fa   :  { %v548_v54 = vpack.c.bf16 %v335_v28, %v285_v15  ;;  %v551_v20 = vpack.c.bf16 %v334_v53, %v284_v12  ;;  %v641_v56 = vpop.permute.xlu0 %640  ;;  %v361_v55 = vpop.permute.xlu1 %360 }
 0x1fb   :  { %v643_v21 = vunpack.i.h.bf16 %v641_v56  ;;  %v642_v57 = vunpack.i.l.bf16 %v641_v56 }
 0x1fc   :  { %550 = vmatprep.subr.msk.bf16.mxu1 %vm874_vm13, %v548_v54  ;;  %vm1082_vm13 = vcmp.lt.s32.totalorder %v774_v7, 111 }
 0x1fd   :  { %v354_v13 = vsel %vm1080_vm4, %v642_v57, %v643_v21  ;;  %v355_v41 = vsel %vm1081_vm1, %v643_v21, %v642_v57  ;;  %553 = vmatpush1.bf16.msk.msra.mxu1 %vm899_vm7, %v551_v20  ;;  %vm1083_vm7 = vmmov %vm1082_vm13 }
 0x1fe   :  { %v554_v60 = vpack.c.bf16 %v355_v41, %v345_v59  ;;  %v557_v63 = vpack.c.bf16 %v354_v13, %v344_v58  ;;  %v363_v2 = vpop.permute.xlu0 %362 }
 0x1ff   :  { %v365_v3 = vsel %vm1082_vm13, %v363_v2, %v361_v55  ;;  %v364_v5 = vsel %vm1083_vm7, %v361_v55, %v363_v2 }
 0x200   :  { %556 = vmatprep.subr.msk.bf16.mxu1 %vm905_vm2, %v554_v60  ;;  %vm1084_vm2 = vcmask 588800  }
 0x201   :  { %559 = vmatpush1.bf16.msk.msra.mxu1 %vm917_vm5, %v557_v63 }
 0x202   :  { %510 = vmatprep.subr.msk.mxu1 %vm927_vm14, %v365_v3 }
 0x205   :  { %511 = vmatpush1.msk.msra.mxu1 %vm812_vm10, %v364_v5 }
 0x206   :  { %483 = vmatmul.mubr.msk.f32.vlgmr.msra.gmra.mrb[0].mxu1 %vm1084_vm2, %v370_v61 }
 0x20b   :  { %v58_v62 = vpop.permute.xlu1 %57 }
 0x20c   :  { %v286_v9 = vadd.f32 %v58_v62, %v751_v0  ;;  %v287_v4 = vadd.f32 %v58_v62, %v756_v1 }
 0x2d9   :  { %v458_v6 = vpop.f32.mrb[0].mxu1 }
 0x2da   :  { %v463_v10 = vadd.f32 %v458_v6, %v286_v9  ;;  %v460_v8 = vpop.f32.mrb[1].mxu1 }
 0x2db   :  { %v464_v11 = vadd.f32 %v460_v8, %v287_v4 }
 0x2dc   :  { %465 = vst [vmem:[#allocation6] sm:$0xff] %v463_v10 }
 0x2dd   :  { %466 = vst [vmem:[#allocation6 + $0x8] sm:$0xff] %v464_v11 }
 0x2de   :  { %678 = shalt.err (!%p675_p12)
}
 0x2df   :  { %s679_s23 = scalar_lea.hbm %s1033_s5, 256 }
 0x2e0   :  { %p680_p13 = scmp.ne.s32.totalorder %s1033_s5, %s679_s23  ;;  %p683_p0 = scmp.lt.u32.totalorder %s679_s23, %s1033_s5 }
 0x2e2   :  { %p685_p1 = pnand %p683_p0, %p680_p13 }
 0x2e4   :  { %688 = shalt.err (!%p685_p1)
}
 0x2e5   :  { %476 = dma.vmem_to_hbm [thread:$0]  %s474_s20, 256, %s1033_s5, [#allocation5]  }
 0x2e6   :  { %691 = dma.done.wait [#allocation5], 256  }
 0x2e7   :  { %692 = vsyncadd [#allocation5], 4294967040 }
 0x2e8   :  { %480 = vsyncpa [#allocation4], 1 }
 0x2e9   :  { %481 = vsyncpa [#allocation5], 1 }

</bundles_post_ra>
